<compile_context>
chip_gen: v6e
topology: v6e:2x2x1
jax: 0.10.0
libtpu: 0.0.40
codegen_flags: <defaults>
</compile_context>

<pallas_src>
import functools

import numpy as np
import jax
import jax.numpy as jnp
from jax.experimental import pallas as pl
from jax.experimental.pallas import tpu as pltpu

EPS = 1e-05
_LANES = 128


def _row_kernel(z_ref, o_ref, *, h, eps, inv_hm1):
    """One logical row per (sub)lane-row; reduce over the lane-dense last axis.

    Two-pass (centered) unbiased variance; the tile is resident in VMEM so the
    second pass costs only a couple of extra VPU ops per element.
    """
    z = z_ref[...].astype(jnp.float32)                       # (R, h)
    mu = jnp.sum(z, axis=-1, keepdims=True) * (1.0 / h)
    d = z - mu
    var = jnp.sum(d * d, axis=-1, keepdims=True) * inv_hm1   # unbiased (H-1), >= 0
    o_ref[...] = (d * jax.lax.rsqrt(var + eps)).astype(o_ref.dtype)


def _packed_kernel(seg_ref, z_ref, o_ref, *, h, eps, inv_hm1):
    """`pack = 128 // h` logical rows share one 128-lane line.

    The per-segment reduction AND the broadcast-back are one MXU matmul with
    the constant (128,128) block-diagonal 0/1 matrix `seg` (rows stay
    independent: out[r] depends only on z[r]).  Each segmented sum is done as
    two single-pass bf16 matmuls on a hi/lo split of the operand, which keeps
    ~f32 accuracy while using only native bf16 MXU passes.
    """
    z = z_ref[...].astype(jnp.float32)                       # (R, lanes)
    seg = seg_ref[...]                                       # (lanes, lanes) bf16 0/1

    def seg_sum(x):
        hi = x.astype(jnp.bfloat16)
        lo = (x - hi.astype(jnp.float32)).astype(jnp.bfloat16)
        return (jnp.dot(hi, seg, preferred_element_type=jnp.float32)
                + jnp.dot(lo, seg, preferred_element_type=jnp.float32))

    mu = seg_sum(z) * (1.0 / h)                              # broadcast per segment
    d = z - mu
    var = seg_sum(d * d) * inv_hm1                           # unbiased (H-1), >= 0
    o_ref[...] = (d * jax.lax.rsqrt(var + eps)).astype(o_ref.dtype)


def layer_norm(z, *, eps=EPS):
    orig_shape = z.shape
    h = orig_shape[-1]
    dtype = z.dtype
    itemsize = jnp.dtype(dtype).itemsize
    sublanes = {1: 32, 2: 16}.get(itemsize, 8)               # dtype-native sublane count

    z2 = z.reshape(-1, h)
    rows = z2.shape[0]

    # 1/(H-1); H == 1 -> NaN output, matching torch's unbiased var of 1 element.
    inv_hm1 = (1.0 / (h - 1)) if h > 1 else float("nan")

    # --- lane packing for small hidden sizes: `pack` rows per 128-lane line ---
    pack = 1
    if h < _LANES and _LANES % h == 0:
        pack = _LANES // h
    if pack > 1 and rows % pack != 0:
        # pad only the <= pack-1 remainder rows so the main path stays lane-dense
        z2 = jnp.pad(z2, ((0, (-rows) % pack), (0, 0)))
    prows = z2.shape[0] // pack
    lanes = pack * h
    zp = z2.reshape(prows, lanes)                            # contiguous -> free reshape

    # --- generation-aware VMEM budget (v5e/v6e: 128 MiB, v7x: 64 MiB/TC) ---
    try:
        vmem_cap = int(pltpu.get_tpu_info().vmem_capacity_bytes)
    except Exception:
        vmem_cap = 64 * 1024 * 1024                          # conservative fallback
    vmem_cap = max(vmem_cap, 32 * 1024 * 1024)
    vmem_budget = (vmem_cap * 5) // 8
    # double-buffered in+out HBM-dtype tiles + ~6 f32 temporaries in-kernel
    bytes_per_row = lanes * (4 * itemsize + 6 * 4)
    cap = vmem_budget // bytes_per_row
    cap = max(sublanes, min(4096, (cap // sublanes) * sublanes))
    if prows <= sublanes:
        row_tile = prows                                     # single full-extent block
    else:
        row_tile = min(cap, (prows // sublanes) * sublanes)

    # --- grid: cdiv only; Pallas masks the ragged tail (no pad / slice) ---
    num_blocks = pl.cdiv(prows, row_tile)

    tile_bytes = row_tile * lanes * itemsize
    vmem_limit = 4 * tile_bytes + 6 * row_tile * lanes * 4 + (2 << 20)
    vmem_limit = int(max(16 << 20, min(vmem_cap - (4 << 20), vmem_limit)))

    data_spec_in = pl.BlockSpec((row_tile, lanes), lambda i: (i, 0))
    data_spec_out = pl.BlockSpec((row_tile, lanes), lambda i: (i, 0))

    if pack > 1:
        # constant block-diagonal 0/1 segment matrix; resident (constant index_map)
        seg = jnp.asarray(np.kron(np.eye(pack), np.ones((h, h))), dtype=jnp.bfloat16)
        kernel = functools.partial(_packed_kernel, h=h, eps=eps, inv_hm1=inv_hm1)
        in_specs = [pl.BlockSpec((lanes, lanes), lambda i: (0, 0)), data_spec_in]
        operands = (seg, zp)
    else:
        kernel = functools.partial(_row_kernel, h=h, eps=eps, inv_hm1=inv_hm1)
        in_specs = [data_spec_in]
        operands = (zp,)

    out = pl.pallas_call(
        kernel,
        out_shape=jax.ShapeDtypeStruct((prows, lanes), dtype),
        grid_spec=pltpu.PrefetchScalarGridSpec(
            num_scalar_prefetch=0,
            grid=(num_blocks,),
            in_specs=in_specs,
            out_specs=data_spec_out,
        ),
        compiler_params=pltpu.CompilerParams(
            dimension_semantics=("parallel",),
            vmem_limit_bytes=vmem_limit,
        ),
        cost_estimate=pl.CostEstimate(
            flops=16 * prows * lanes,
            transcendentals=prows * pack,
            bytes_accessed=2 * prows * lanes * itemsize,
        ),
    )(*operands)

    out = out.reshape(-1, h)
    if out.shape[0] != rows:                                 # only if pack-remainder padded
        out = out[:rows]
    return out.reshape(orig_shape)


if __name__ == "__main__":
    key = jax.random.PRNGKey(0)
    batch, seq, hidden = 2, 8, 32
    z = jax.random.normal(key, (batch, seq, hidden), dtype=jnp.float32)

    y = layer_norm(z)
    jax.block_until_ready(y)

    # pure-JAX reference with unbiased variance (matches the PyTorch spec module)
    mean = jnp.mean(z, axis=-1, keepdims=True)
    var = jnp.sum((z - mean) ** 2, axis=-1, keepdims=True) / (hidden - 1)
    ref = (z - mean) / jnp.sqrt(var + EPS)
    assert jnp.allclose(y, ref, atol=1e-4, rtol=1e-4), float(jnp.max(jnp.abs(y - ref)))

    print("KERNEL_OK")
</pallas_src>

<mosaic_0001>
module attributes {stable_mosaic.version = 11 : i64} {
  func.func @_packed_kernel(%arg0: i32, %arg1: memref<128x128xbf16, #tpu.memory_space<vmem>>, %arg2: memref<4x128xf32, #tpu.memory_space<vmem>>, %arg3: memref<4x128xf32, #tpu.memory_space<vmem>>) attributes {dimension_semantics = [#tpu.dimension_semantics<parallel>], iteration_bounds = array<i64: 1>, scalar_prefetch = 0 : i64, scratch_operands = 0 : i64, tpu.core_type = #tpu.core_type<tc>, window_params = [{pipeline_mode = #tpu.pipeline_mode<synchronous>, transform_indices = @transform_0, window_bounds = array<i64: 128, 128>}, {transform_indices = @transform_1, window_bounds = array<i64: 4, 128>}, {transform_indices = @transform_2, window_bounds = array<i64: 4, 128>}]} {
    %c0 = arith.constant 0 : index
    %c0_0 = arith.constant 0 : index
    %0 = vector.load %arg2[%c0, %c0_0] : memref<4x128xf32, #tpu.memory_space<vmem>>, vector<4x128xf32>
    %c0_1 = arith.constant 0 : index
    %c0_2 = arith.constant 0 : index
    %1 = vector.load %arg1[%c0_1, %c0_2] : memref<128x128xbf16, #tpu.memory_space<vmem>>, vector<128x128xbf16>
    %2 = arith.truncf %0 : vector<4x128xf32> to vector<4x128xbf16>
    %3 = arith.extf %2 : vector<4x128xbf16> to vector<4x128xf32>
    %4 = arith.subf %0, %3 : vector<4x128xf32>
    %5 = arith.truncf %4 : vector<4x128xf32> to vector<4x128xbf16>
    %cst = arith.constant dense<0.000000e+00> : vector<4x128xf32>
    %6 = tpu.matmul %2, %1, %cst {dimension_numbers = #tpu.dot_dimension_numbers<[1], [0], [0], [1], [0, 0, 1, 1], [], []>} : vector<4x128xbf16>, vector<128x128xbf16>, vector<4x128xf32> -> vector<4x128xf32>
    %cst_3 = arith.constant dense<0.000000e+00> : vector<4x128xf32>
    %7 = tpu.matmul %5, %1, %cst_3 {dimension_numbers = #tpu.dot_dimension_numbers<[1], [0], [0], [1], [0, 0, 1, 1], [], []>} : vector<4x128xbf16>, vector<128x128xbf16>, vector<4x128xf32> -> vector<4x128xf32>
    %8 = arith.addf %6, %7 : vector<4x128xf32>
    %cst_4 = arith.constant 3.125000e-02 : f32
    %9 = vector.broadcast %cst_4 : f32 to vector<4x128xf32>
    %10 = arith.mulf %8, %9 : vector<4x128xf32>
    %11 = arith.subf %0, %10 : vector<4x128xf32>
    %12 = arith.mulf %11, %11 : vector<4x128xf32>
    %13 = arith.truncf %12 : vector<4x128xf32> to vector<4x128xbf16>
    %14 = arith.extf %13 : vector<4x128xbf16> to vector<4x128xf32>
    %15 = arith.subf %12, %14 : vector<4x128xf32>
    %16 = arith.truncf %15 : vector<4x128xf32> to vector<4x128xbf16>
    %cst_5 = arith.constant dense<0.000000e+00> : vector<4x128xf32>
    %17 = tpu.matmul %13, %1, %cst_5 {dimension_numbers = #tpu.dot_dimension_numbers<[1], [0], [0], [1], [0, 0, 1, 1], [], []>} : vector<4x128xbf16>, vector<128x128xbf16>, vector<4x128xf32> -> vector<4x128xf32>
    %cst_6 = arith.constant dense<0.000000e+00> : vector<4x128xf32>
    %18 = tpu.matmul %16, %1, %cst_6 {dimension_numbers = #tpu.dot_dimension_numbers<[1], [0], [0], [1], [0, 0, 1, 1], [], []>} : vector<4x128xbf16>, vector<128x128xbf16>, vector<4x128xf32> -> vector<4x128xf32>
    %19 = arith.addf %17, %18 : vector<4x128xf32>
    %cst_7 = arith.constant 0.0322580636 : f32
    %20 = vector.broadcast %cst_7 : f32 to vector<4x128xf32>
    %21 = arith.mulf %19, %20 : vector<4x128xf32>
    %cst_8 = arith.constant 9.99999974E-6 : f32
    %22 = vector.broadcast %cst_8 : f32 to vector<4x128xf32>
    %23 = arith.addf %21, %22 : vector<4x128xf32>
    %24 = math.rsqrt %23 : vector<4x128xf32>
    %25 = arith.mulf %11, %24 : vector<4x128xf32>
    %c0_9 = arith.constant 0 : index
    %c0_10 = arith.constant 0 : index
    %26 = vector.load %arg3[%c0_9, %c0_10] : memref<4x128xf32, #tpu.memory_space<vmem>>, vector<4x128xf32>
    tpu.vector_store %arg3[%c0_9, %c0_10], %25 {strides = array<i32>} : memref<4x128xf32, #tpu.memory_space<vmem>>, vector<4x128xf32>,
    return
  }
  func.func @transform_0(%arg0: i32) -> (i32, i32) {
    %c0_i32 = arith.constant 0 : i32
    %c0_i32_0 = arith.constant 0 : i32
    %c0_i32_1 = arith.constant 0 : i32
    return %c0_i32, %c0_i32_0 : i32, i32
  }
  func.func @transform_1(%arg0: i32) -> (i32, i32) {
    %c0_i32 = arith.constant 0 : i32
    %c0_i32_0 = arith.constant 0 : i32
    return %arg0, %c0_i32 : i32, i32
  }
  func.func @transform_2(%arg0: i32) -> (i32, i32) {
    %c0_i32 = arith.constant 0 : i32
    %c0_i32_0 = arith.constant 0 : i32
    return %arg0, %c0_i32 : i32, i32
  }
}

</mosaic_0001>

<bundles_post_ra>
// kernel: tpu_custom_call.1
= control target key start
LH: loop header
LB: loop body
LE: loop exit
PB: predicated region body
PF: predicated region fallthrough
CT: control target
= control target key end

     0   :  { %7 = vsyncpa [#allocation3], 0  ;;  %s580_s0 = inlined_call_operand.hbm [shape: bf16[128,128], index: 0, kind: input, shape index: {}]   ;;  %s581_s1 = inlined_call_operand.hbm [shape: f32[4,128], index: 1, kind: input, shape index: {}]   ;;  %s582_s2 = inlined_call_operand.hbm [shape: f32[4,128], index: 2, kind: output, shape index: {}]  }
   0x1   :  { %8 = vsyncpa [#allocation6], 0 }
   0x2   :  { %9 = vsyncpa [#allocation4], 0  ;;  %s503_s9 = smov [#allocation2]  }
   0x3   :  { %s15_s10 = sshll.u32 %s503_s9, 4  ;;  %s16_s10 = int_to_ptr.vmem [resolvable:$true] %s15_s10 }
   0x4   :  { %s445_s11 = scalar_lea.vmem %s16_s10, 1024  ;;  %p450_p1 = scmp.lt.s32.totalorder %s16_s10, %s16_s10 }
   0x5   :  { %p446_p0 = scmp.ne.s32.totalorder %s16_s10, %s445_s11  ;;  %p451_p2 = scmp.lt.s32.totalorder %s445_s11, %s445_s11 }
   0x7   :  { %p452_p3 = por %p451_p2, %p450_p1 }
   0x9   :  { %p453_p4 = pnand %p452_p3, %p446_p0 }
   0xb   :  { %456 = shalt.err (!%p453_p4)
}
   0xc   :  { %s504_s12 = smov 64   ;;  %s505_s13 = smov 4  }
   0xd   :  { %21 = dma.hbm_to_vmem [thread:$0]  %s580_s0, 1024, %s16_s10, [#allocation3], %s504_s12, %s504_s12, %s505_s13  }
   0xe   :  { %s506_s16 = smov [#allocation5]  }
   0xf   :  { %s28_s17 = sshll.u32 %s506_s16, 4  ;;  %s29_s17 = int_to_ptr.vmem [resolvable:$true] %s28_s17 }
  0x10   :  { %s465_s18 = scalar_lea.vmem %s29_s17, 64  ;;  %p470_p6 = scmp.lt.s32.totalorder %s29_s17, %s29_s17 }
  0x11   :  { %p466_p5 = scmp.ne.s32.totalorder %s29_s17, %s465_s18  ;;  %p471_p7 = scmp.lt.s32.totalorder %s465_s18, %s465_s18 }
  0x13   :  { %p472_p8 = por %p471_p7, %p470_p6 }
  0x15   :  { %p473_p9 = pnand %p472_p8, %p466_p5 }
  0x17   :  { %476 = shalt.err (!%p473_p9)
}
  0x18   :  { %31 = dma.hbm_to_vmem [thread:$0]  %s581_s1, 64, %s29_s17, [#allocation6]  }
  0x19   :  { %497 = dma.done.wait [#allocation3], 1024  }
  0x1a   :  { %498 = vsyncadd [#allocation3], 4294966272 }
  0x1b   :  { %499 = dma.done.wait [#allocation6], 64  }
  0x1c   :  { %500 = vsyncadd [#allocation6], 4294967232  ;;  %v507_v0 = vmov 0.0   ;;  %vm508_vm0 = vmmov 0   ;;  %v427_v1 = vld [vmem:[#allocation2 + $0x38] sm:$0xff]   ;;  %v428_v2 = vld [vmem:[#allocation2 + $0x30] sm:$0xff]  }
  0x1d   :  { %340 = vmatprep.subr.bf16.mxu0 %v507_v0  ;;  %360 = vmatprep.subr.bf16.mxu1 %v507_v0  ;;  %v429_v3 = vld [vmem:[#allocation2 + $0x28] sm:$0xff]   ;;  %v430_v4 = vld [vmem:[#allocation2 + $0x20] sm:$0xff]   ;;  %v431_v5 = vld [vmem:[#allocation2 + $0x18] sm:$0xff]   ;;  %s509_s0 = smov [#allocation7]  }
  0x1e   :  { %356 = vmatprep.mubr.msk.bf16.mxu0 %vm508_vm0, %v507_v0  ;;  %376 = vmatprep.mubr.msk.bf16.mxu1 %vm508_vm0, %v507_v0  ;;  %v543_v6 = vld [vmem:[#allocation5] sm:$0xf]  ;;  %v432_v8 = vld [vmem:[#allocation2 + $0x10] sm:$0xff]   ;;  %v433_v10 = vld [vmem:[#allocation2 + $0x8] sm:$0xff]   ;;  %s286_s1 = sshll.u32 %s509_s0, 4  ;;  %s287_s1 = int_to_ptr.vmem [resolvable:$true] %s286_s1 }
  0x1f   :  { %341 = vmatpush3.bf16.msra.mxu0 %v427_v1  ;;  %361 = vmatpush3.bf16.msra.mxu1 %v427_v1  ;;  %v56_v7 = vpack.c.bf16 %v543_v6, %v543_v6  ;;  %v434_v12 = vld [vmem:[#allocation2] sm:$0xff]   ;;  %s477_s21 = scalar_lea.vmem %s287_s1, 64  ;;  %p482_p11 = scmp.lt.s32.totalorder %s287_s1, %s287_s1 }
  0x20   :  { %342 = vmatprep.subr.bf16.mxu0 %v507_v0  ;;  %362 = vmatprep.subr.bf16.mxu1 %v507_v0  ;;  %p478_p10 = scmp.ne.s32.totalorder %s287_s1, %s477_s21  ;;  %p483_p12 = scmp.lt.s32.totalorder %s477_s21, %s477_s21 }
  0x21   :  { %v57_v9 = vunpack.c.l.bf16 %v56_v7 }
  0x22   :  { %p484_p13 = por %p483_p12, %p482_p11 }
  0x23   :  { %343 = vmatpush3.bf16.msra.mxu0 %v428_v2  ;;  %363 = vmatpush3.bf16.msra.mxu1 %v428_v2  ;;  %v58_v11 = vsub.f32 %v543_v6, %v57_v9 }
  0x24   :  { %344 = vmatprep.subr.bf16.mxu0 %v507_v0  ;;  %364 = vmatprep.subr.bf16.mxu1 %v507_v0  ;;  %p485_p0 = pnand %p484_p13, %p478_p10 }
  0x25   :  { %v59_v13 = vpack.c.bf16 %v58_v11, %v58_v11 }
  0x27   :  { %345 = vmatpush3.bf16.msra.mxu0 %v429_v3  ;;  %365 = vmatpush3.bf16.msra.mxu1 %v429_v3 }
  0x28   :  { %346 = vmatprep.subr.bf16.mxu0 %v507_v0  ;;  %366 = vmatprep.subr.bf16.mxu1 %v507_v0 }
  0x2b   :  { %347 = vmatpush3.bf16.msra.mxu0 %v430_v4  ;;  %367 = vmatpush3.bf16.msra.mxu1 %v430_v4 }
  0x2c   :  { %348 = vmatprep.subr.bf16.mxu0 %v507_v0  ;;  %368 = vmatprep.subr.bf16.mxu1 %v507_v0 }
  0x2f   :  { %349 = vmatpush3.bf16.msra.mxu0 %v431_v5  ;;  %369 = vmatpush3.bf16.msra.mxu1 %v431_v5 }
  0x30   :  { %350 = vmatprep.subr.bf16.mxu0 %v507_v0  ;;  %370 = vmatprep.subr.bf16.mxu1 %v507_v0 }
  0x33   :  { %351 = vmatpush3.bf16.msra.mxu0 %v432_v8  ;;  %371 = vmatpush3.bf16.msra.mxu1 %v432_v8 }
  0x34   :  { %352 = vmatprep.subr.bf16.mxu0 %v507_v0  ;;  %372 = vmatprep.subr.bf16.mxu1 %v507_v0 }
  0x37   :  { %353 = vmatpush3.bf16.msra.mxu0 %v433_v10  ;;  %373 = vmatpush3.bf16.msra.mxu1 %v433_v10 }
  0x38   :  { %354 = vmatprep.subr.bf16.mxu0 %v507_v0  ;;  %374 = vmatprep.subr.bf16.mxu1 %v507_v0 }
  0x3b   :  { %355 = vmatpush3.bf16.msra.mxu0 %v434_v12  ;;  %375 = vmatpush3.bf16.msra.mxu1 %v434_v12 }
  0x3c   :  { %400 = vmatprep.subr.bf16.mxu1 %v507_v0  ;;  %380 = vmatprep.subr.bf16.mxu0 %v507_v0 }
  0x3e   :  { %357 = vmatmul.mubr.bf16.vlgmr.msra.gmra.mxu0 %v59_v13  ;;  %377 = vmatmul.mubr.bf16.vlgmr.msra.gmra.mxu1 %v56_v7 }
  0x3f   :  { %401 = vmatpush3.bf16.msra.mxu1 %v427_v1  ;;  %381 = vmatpush3.bf16.msra.mxu0 %v427_v1 }
  0x40   :  { %402 = vmatprep.subr.bf16.mxu1 %v507_v0  ;;  %382 = vmatprep.subr.bf16.mxu0 %v507_v0 }
  0x41   :  { %416 = vmatprep.mubr.msk.bf16.mxu1 %vm508_vm0, %v507_v0  ;;  %396 = vmatprep.mubr.msk.bf16.mxu0 %vm508_vm0, %v507_v0 }
  0x43   :  { %403 = vmatpush3.bf16.msra.mxu1 %v428_v2  ;;  %383 = vmatpush3.bf16.msra.mxu0 %v428_v2 }
  0x44   :  { %404 = vmatprep.subr.bf16.mxu1 %v507_v0  ;;  %384 = vmatprep.subr.bf16.mxu0 %v507_v0 }
  0x47   :  { %405 = vmatpush3.bf16.msra.mxu1 %v429_v3  ;;  %385 = vmatpush3.bf16.msra.mxu0 %v429_v3 }
  0x48   :  { %406 = vmatprep.subr.bf16.mxu1 %v507_v0  ;;  %386 = vmatprep.subr.bf16.mxu0 %v507_v0 }
  0x4b   :  { %407 = vmatpush3.bf16.msra.mxu1 %v430_v4  ;;  %387 = vmatpush3.bf16.msra.mxu0 %v430_v4 }
  0x4c   :  { %408 = vmatprep.subr.bf16.mxu1 %v507_v0  ;;  %388 = vmatprep.subr.bf16.mxu0 %v507_v0 }
  0x4f   :  { %409 = vmatpush3.bf16.msra.mxu1 %v431_v5  ;;  %389 = vmatpush3.bf16.msra.mxu0 %v431_v5 }
  0x50   :  { %410 = vmatprep.subr.bf16.mxu1 %v507_v0  ;;  %390 = vmatprep.subr.bf16.mxu0 %v507_v0 }
  0x53   :  { %411 = vmatpush3.bf16.msra.mxu1 %v432_v8  ;;  %391 = vmatpush3.bf16.msra.mxu0 %v432_v8 }
  0x54   :  { %412 = vmatprep.subr.bf16.mxu1 %v507_v0  ;;  %392 = vmatprep.subr.bf16.mxu0 %v507_v0 }
  0x57   :  { %413 = vmatpush3.bf16.msra.mxu1 %v433_v10  ;;  %393 = vmatpush3.bf16.msra.mxu0 %v433_v10 }
  0x58   :  { %414 = vmatprep.subr.bf16.mxu1 %v507_v0  ;;  %394 = vmatprep.subr.bf16.mxu0 %v507_v0 }
  0x5b   :  { %415 = vmatpush3.bf16.msra.mxu1 %v434_v12  ;;  %395 = vmatpush3.bf16.msra.mxu0 %v434_v12 }
  0xfe   :  { %v142_v14 = vpop.f32.mrf.mxu0  ;;  %v182_v15 = vpop.f32.mrf.mxu1 }
  0xff   :  { %v183_v16 = vadd.f32 %v182_v15, %v142_v14 }
 0x100   :  { %v358_v17 = vpop.f32.mrf.mxu0  ;;  %v378_v18 = vpop.f32.mrf.mxu1 }
 0x101   :  { %v188_v19 = vmul.f32 0.03125, %v183_v16 }
 0x102   :  { %v145_v20 = vpop.f32.mrf.mxu0  ;;  %v185_v21 = vpop.f32.mrf.mxu1 }
 0x103   :  { %v189_v22 = vsub.f32 %v543_v6, %v188_v19 }
 0x104   :  { %v359_v23 = vpop.f32.mrf.mxu0  ;;  %v379_v24 = vpop.f32.mrf.mxu1 }
 0x105   :  { %v190_v25 = vmul.f32 %v189_v22, %v189_v22 }
 0x107   :  { %v191_v26 = vpack.c.bf16 %v190_v25, %v190_v25 }
 0x109   :  { %v192_v27 = vunpack.c.l.bf16 %v191_v26  ;;  %417 = vmatmul.mubr.bf16.vlgmr.msra.gmra.mxu1 %v191_v26 }
 0x10b   :  { %v193_v28 = vsub.f32 %v190_v25, %v192_v27 }
 0x10d   :  { %v194_v29 = vpack.c.bf16 %v193_v28, %v193_v28 }
 0x10f   :  { %397 = vmatmul.mubr.bf16.vlgmr.msra.gmra.mxu0 %v194_v29 }
 0x1c9   :  { %v269_v30 = vpop.f32.mrf.mxu1 }
 0x1cb   :  { %v418_v31 = vpop.f32.mrf.mxu1 }
 0x1cd   :  { %v272_v32 = vpop.f32.mrf.mxu1 }
 0x1cf   :  { %v229_v33 = vpop.f32.mrf.mxu0  ;;  %v419_v34 = vpop.f32.mrf.mxu1 }
 0x1d0   :  { %v270_v35 = vadd.f32 %v269_v30, %v229_v33 }
 0x1d1   :  { %v398_v36 = vpop.f32.mrf.mxu0 }
 0x1d2   :  { %v275_v37 = vmul.f32 0.032258064, %v270_v35 }
 0x1d3   :  { %v232_v38 = vpop.f32.mrf.mxu0 }
 0x1d4   :  { %v276_v39 = vadd.f32 1e-05, %v275_v37 }
 0x1d5   :  { %v399_v40 = vpop.f32.mrf.mxu0 }
 0x1d6   :  { %435 = vrsqrt.f32 %v276_v39 }
 0x1e3   :  { %v436_v41 = vpop.eup %435 }
 0x1e4   :  { %v278_v42 = vmul.f32 %v436_v41, %v189_v22 }
 0x1e6   :  { %279 = vst [vmem:[#allocation7] sm:$0xf] %v278_v42 }
 0x1e7   :  { %488 = shalt.err (!%p485_p0)
}
 0x1e8   :  { %289 = dma.vmem_to_hbm [thread:$0]  %s287_s1, 64, %s582_s2, [#allocation4]  }
 0x1e9   :  { %501 = dma.done.wait [#allocation4], 64  }
 0x1ea   :  { %502 = vsyncadd [#allocation4], 4294967232 }
 0x1eb   :  { %293 = vsyncpa [#allocation3], 1 }
 0x1ec   :  { %294 = vsyncpa [#allocation6], 1 }
 0x1ed   :  { %295 = vsyncpa [#allocation4], 1 }

</bundles_post_ra>
